<compile_context>
chip_gen: v7x
topology: tpu7x:2x2x1
jax: 0.10.0
libtpu: 0.0.40
codegen_flags: <defaults>
</compile_context>

<pallas_src>
import jax
import jax.numpy as jnp
from jax.experimental import pallas as pl
from jax.experimental.pallas import tpu as pltpu

FEAT_DIM = 1280


def _choose_spatial_tile(P):
    # Largest lane-aligned tile (<= 4 Ki lanes) that divides P; else full axis.
    for pt in (4096, 2048, 1024, 512, 256, 128):
        if P % pt == 0:
            return pt
    return P


def effnet_pool_head_kernel(x_ref, wfold_ref, b12_ref, y12_ref, acc_ref):
    # x_ref:   (B, Cin, Pt)        NCHW input block, spatial axis on lanes
    # wfold:   (Cin, 2*classnum)   stem folded into both heads, pre-scaled 1/P
    # b12:     (1, 2*classnum)     packed biases
    # y12:     (B, 2*classnum)     packed head outputs
    # acc:     (B, Cin) f32 VMEM scratch -- running spatial sum
    p = pl.program_id(0)

    @pl.when(p == 0)
    def _():
        acc_ref[...] = jnp.zeros_like(acc_ref)

    # Partial spatial sum over the lane axis (XLU reduce; the 1/P average and
    # the linear "features" projection are folded into wfold).
    acc_ref[...] += jnp.sum(x_ref[...], axis=-1)                  # (B, Cin)

    # Dropout (classifier[0]): identity in eval mode.

    @pl.when(p == pl.num_programs(0) - 1)
    def _():
        # Both classifier heads as one tiny fused matmul + broadcast bias.
        y12_ref[...] = (
            jnp.dot(acc_ref[...], wfold_ref[...],
                    preferred_element_type=jnp.float32)
            + b12_ref[...])                                       # (B, 2*CN)


def pack_and_fold_params(wstem, w1, b1, w2, b2, spatial_size):
    """One-time weight prep, hoisted out of the per-inference path.

    Folds the linear 1x1-conv stand-in for effnet.features and the 1/P
    average-pool scale into the two packed classifier heads.
    """
    w12 = jnp.concatenate([w1, w2], axis=1)                   # (1280, 2*CN)
    w_fold = (wstem @ w12) / jnp.float32(spatial_size)        # (Cin, 2*CN)
    b12 = jnp.concatenate([b1, b2], axis=0)[None, :]           # (1, 2*CN)
    return w_fold, b12


def customized_effnet_forward(x_nchw, w_fold, b12):
    """x_nchw: (B, Cin, H, W) float32 -- matches the PyTorch input convention."""
    B, Cin, H, W = x_nchw.shape
    P = H * W
    two_cn = w_fold.shape[1]
    cn = two_cn // 2

    # Contiguous reshape only (no transpose): spatial axis P maps to lanes.
    x = x_nchw.reshape(B, Cin, P)

    Pt = _choose_spatial_tile(P)
    grid = (P // Pt,)

    cost = pl.CostEstimate(
        flops=B * Cin * P + 2 * B * Cin * two_cn,
        transcendentals=0,
        bytes_accessed=4 * (x.size + w_fold.size + b12.size + B * two_cn),
    )

    y12 = pl.pallas_call(
        effnet_pool_head_kernel,
        out_shape=jax.ShapeDtypeStruct((B, two_cn), jnp.float32),
        grid_spec=pltpu.PrefetchScalarGridSpec(
            num_scalar_prefetch=0,
            grid=grid,
            in_specs=[
                pl.BlockSpec((B, Cin, Pt), lambda p: (0, 0, p)),
                pl.BlockSpec((Cin, two_cn), lambda p: (0, 0)),
                pl.BlockSpec((1, two_cn), lambda p: (0, 0)),
            ],
            out_specs=pl.BlockSpec((B, two_cn), lambda p: (0, 0)),
            scratch_shapes=[pltpu.VMEM((B, Cin), jnp.float32)],
        ),
        compiler_params=pltpu.CompilerParams(
            dimension_semantics=("arbitrary",)),
        cost_estimate=cost,
    )(x, w_fold, b12)

    # Split the packed output into the module's (y, y2) pair.
    return y12[:, :cn], y12[:, cn:]


def reference_forward(x_nchw, wstem, w1, b1, w2, b2):
    # Faithful order: per-position features -> avgpool -> flatten -> heads.
    B, Cin, H, W = x_nchw.shape
    x = jnp.transpose(x_nchw, (0, 2, 3, 1)).reshape(B, H * W, Cin)
    feats = jnp.einsum('bpc,cf->bpf', x, wstem)
    pooled = jnp.mean(feats, axis=1)
    return pooled @ w1 + b1, pooled @ w2 + b2


if __name__ == "__main__":
    key = jax.random.PRNGKey(0)
    k_x, k_stem, k_w1, k_b1, k_w2, k_b2 = jax.random.split(key, 6)

    B, Cin, H, W = 2, 4, 16, 16
    CLASSNUM = 8
    x = jax.random.normal(k_x, (B, Cin, H, W), dtype=jnp.float32)

    # Deterministic parameter init (shapes implied by the module __init__).
    wstem = jax.random.normal(k_stem, (Cin, FEAT_DIM), dtype=jnp.float32) * 0.05
    w1 = jax.random.normal(k_w1, (FEAT_DIM, CLASSNUM), dtype=jnp.float32) * 0.02
    b1 = jax.random.normal(k_b1, (CLASSNUM,), dtype=jnp.float32) * 0.02
    w2 = jax.random.normal(k_w2, (FEAT_DIM, CLASSNUM), dtype=jnp.float32) * 0.02
    b2 = jax.random.normal(k_b2, (CLASSNUM,), dtype=jnp.float32) * 0.02

    # One-time weight prep (hoisted out of the inference path).
    w_fold, b12 = pack_and_fold_params(wstem, w1, b1, w2, b2, H * W)
    w_fold, b12 = jax.block_until_ready((w_fold, b12))

    fwd = jax.jit(customized_effnet_forward)
    y1, y2 = fwd(x, w_fold, b12)
    jax.block_until_ready((y1, y2))

    r1, r2 = reference_forward(x, wstem, w1, b1, w2, b2)
    assert y1.shape == (B, CLASSNUM) and y2.shape == (B, CLASSNUM)
    assert jnp.allclose(y1, r1, rtol=1e-2, atol=1e-2)
    assert jnp.allclose(y2, r2, rtol=1e-2, atol=1e-2)

    print("KERNEL_OK")
</pallas_src>

<mosaic_0001>
module attributes {stable_mosaic.version = 11 : i64} {
  func.func @effnet_pool_head_kernel(%arg0: i32, %arg1: memref<2x4x256xf32, #tpu.memory_space<vmem>>, %arg2: memref<4x16xf32, #tpu.memory_space<vmem>>, %arg3: memref<1x16xf32, #tpu.memory_space<vmem>>, %arg4: memref<2x16xf32, #tpu.memory_space<vmem>>, %arg5: memref<2x4xf32, #tpu.memory_space<vmem>>) attributes {dimension_semantics = [#tpu.dimension_semantics<arbitrary>], iteration_bounds = array<i64: 1>, scalar_prefetch = 0 : i64, scratch_operands = 1 : i64, tpu.core_type = #tpu.core_type<tc>, window_params = [{transform_indices = @transform_0, window_bounds = array<i64: 2, 4, 256>}, {pipeline_mode = #tpu.pipeline_mode<synchronous>, transform_indices = @transform_1, window_bounds = array<i64: 4, 16>}, {pipeline_mode = #tpu.pipeline_mode<synchronous>, transform_indices = @transform_2, window_bounds = array<i64: 1, 16>}, {pipeline_mode = #tpu.pipeline_mode<synchronous>, transform_indices = @transform_3, window_bounds = array<i64: 2, 16>}]} {
    %c0_i32 = arith.constant 0 : i32
    %0 = arith.cmpi eq, %arg0, %c0_i32 : i32
    %1 = arith.extui %0 : i1 to i32
    %c0_i32_0 = arith.constant 0 : i32
    %2 = arith.cmpi ne, %1, %c0_i32_0 : i32
    scf.if %2 {
      %cst_9 = arith.constant 0.000000e+00 : f32
      %11 = vector.broadcast %cst_9 : f32 to vector<2x4xf32>
      %c0_10 = arith.constant 0 : index
      %c0_11 = arith.constant 0 : index
      %12 = vector.load %arg5[%c0_10, %c0_11] : memref<2x4xf32, #tpu.memory_space<vmem>>, vector<2x4xf32>
      tpu.vector_store %arg5[%c0_10, %c0_11], %11 {strides = array<i32>} : memref<2x4xf32, #tpu.memory_space<vmem>>, vector<2x4xf32>,
    } else {
    }
    %c0 = arith.constant 0 : index
    %c0_1 = arith.constant 0 : index
    %3 = vector.load %arg5[%c0, %c0_1] : memref<2x4xf32, #tpu.memory_space<vmem>>, vector<2x4xf32>
    %c0_2 = arith.constant 0 : index
    %c0_3 = arith.constant 0 : index
    %c0_4 = arith.constant 0 : index
    %4 = vector.load %arg1[%c0_2, %c0_3, %c0_4] : memref<2x4x256xf32, #tpu.memory_space<vmem>>, vector<2x4x256xf32>
    %cst = arith.constant dense<0.000000e+00> : vector<2x4xf32>
    %5 = vector.multi_reduction <add>, %4, %cst [2] : vector<2x4x256xf32> to vector<2x4xf32>
    %6 = arith.addf %3, %5 : vector<2x4xf32>
    %c0_5 = arith.constant 0 : index
    %c0_6 = arith.constant 0 : index
    %7 = vector.load %arg5[%c0_5, %c0_6] : memref<2x4xf32, #tpu.memory_space<vmem>>, vector<2x4xf32>
    tpu.vector_store %arg5[%c0_5, %c0_6], %6 {strides = array<i32>} : memref<2x4xf32, #tpu.memory_space<vmem>>, vector<2x4xf32>,
    %c0_i32_7 = arith.constant 0 : i32
    %8 = arith.cmpi eq, %arg0, %c0_i32_7 : i32
    %9 = arith.extui %8 : i1 to i32
    %c0_i32_8 = arith.constant 0 : i32
    %10 = arith.cmpi ne, %9, %c0_i32_8 : i32
    scf.if %10 {
      %c0_9 = arith.constant 0 : index
      %c0_10 = arith.constant 0 : index
      %11 = vector.load %arg5[%c0_9, %c0_10] : memref<2x4xf32, #tpu.memory_space<vmem>>, vector<2x4xf32>
      %c0_11 = arith.constant 0 : index
      %c0_12 = arith.constant 0 : index
      %12 = vector.load %arg2[%c0_11, %c0_12] : memref<4x16xf32, #tpu.memory_space<vmem>>, vector<4x16xf32>
      %cst_13 = arith.constant dense<0.000000e+00> : vector<2x16xf32>
      %13 = tpu.matmul %11, %12, %cst_13 {dimension_numbers = #tpu.dot_dimension_numbers<[1], [0], [0], [1], [0, 0, 1, 1], [], []>} : vector<2x4xf32>, vector<4x16xf32>, vector<2x16xf32> -> vector<2x16xf32>
      %c0_14 = arith.constant 0 : index
      %c0_15 = arith.constant 0 : index
      %14 = vector.load %arg3[%c0_14, %c0_15] : memref<1x16xf32, #tpu.memory_space<vmem>>, vector<1x16xf32>
      %15 = vector.broadcast %14 : vector<1x16xf32> to vector<2x16xf32>
      %16 = arith.addf %13, %15 : vector<2x16xf32>
      %c0_16 = arith.constant 0 : index
      %c0_17 = arith.constant 0 : index
      %17 = vector.load %arg4[%c0_16, %c0_17] : memref<2x16xf32, #tpu.memory_space<vmem>>, vector<2x16xf32>
      tpu.vector_store %arg4[%c0_16, %c0_17], %16 {strides = array<i32>} : memref<2x16xf32, #tpu.memory_space<vmem>>, vector<2x16xf32>,
    } else {
    }
    return
  }
  func.func @transform_0(%arg0: i32) -> (i32, i32, i32) {
    %c0_i32 = arith.constant 0 : i32
    %c0_i32_0 = arith.constant 0 : i32
    %c0_i32_1 = arith.constant 0 : i32
    return %c0_i32, %c0_i32_0, %arg0 : i32, i32, i32
  }
  func.func @transform_1(%arg0: i32) -> (i32, i32) {
    %c0_i32 = arith.constant 0 : i32
    %c0_i32_0 = arith.constant 0 : i32
    %c0_i32_1 = arith.constant 0 : i32
    return %c0_i32, %c0_i32_0 : i32, i32
  }
  func.func @transform_2(%arg0: i32) -> (i32, i32) {
    %c0_i32 = arith.constant 0 : i32
    %c0_i32_0 = arith.constant 0 : i32
    %c0_i32_1 = arith.constant 0 : i32
    return %c0_i32, %c0_i32_0 : i32, i32
  }
  func.func @transform_3(%arg0: i32) -> (i32, i32) {
    %c0_i32 = arith.constant 0 : i32
    %c0_i32_0 = arith.constant 0 : i32
    %c0_i32_1 = arith.constant 0 : i32
    return %c0_i32, %c0_i32_0 : i32, i32
  }
}

</mosaic_0001>

<bundles_post_ra>
// kernel: customized_effnet_forward.1
= control target key start
LH: loop header
LB: loop body
LE: loop exit
PB: predicated region body
PF: predicated region fallthrough
CT: control target
= control target key end

     0   :  { %vm29_vm0 = vcmask 1043456   ;;  %vm18_vm1 = vcmask 25600   ;;  %v167_v10 = vmov 0.0   ;;  %vm168_vm2 = vmmov 0   ;;  %s211_s0 = inlined_call_operand.vmem [shape: f32[2,4,256], index: 0, kind: input, shape index: {}]   ;;  %s212_s1 = inlined_call_operand.vmem [shape: f32[4,16], index: 1, kind: input, shape index: {}]   ;;  %s213_s2 = inlined_call_operand.vmem [shape: f32[1,16], index: 2, kind: input, shape index: {}]   ;;  %s214_s3 = inlined_call_operand.vmem [shape: f32[2,16], index: 3, kind: output, shape index: {}]  }
   0x1   :  { %v21_v0 = vld [vmem:[%s211_s0] sm:$0xff]  ;;  %v22_v1 = vld [vmem:[%s211_s0 + $0x8] sm:$0xff]  ;;  %19 = vst.msk [vmem:[#allocation2] sm:$0x3] %vm18_vm1, %v167_v10  ;;  %158 = vmatprep.subr.mxu0 %v167_v10  ;;  %160 = vmatprep.mubr.msk.f32.mxu0 %vm168_vm2, %v167_v10  ;;  %v42_v12 = vlaneseq  ;;  %vm52_vm3 = vcmask 1041409   ;;  %vm70_vm4 = vcmask 31744  }
   0x2   :  { %v25_v2 = vcombine.high %v21_v0, %v21_v0  ;;  %v30_v3 = vsel %vm29_vm0, %v21_v0, 0.0  ;;  %v26_v4 = vcombine.high %v22_v1, %v22_v1  ;;  %v35_v6 = vsel %vm29_vm0, %v22_v1, 0.0  ;;  %v62_v11 = vld [vmem:[%s212_s1] sm:$0xf] }
   0x3   :  { %159 = vmatpush3.msk.msra.mxu0 %vm29_vm0, %v62_v11  ;;  %v43_v13 = vand.u32 127, %v42_v12  ;;  %v45_v14 = vshrl.u32 %v42_v12, 7  ;;  %v153_v24 = vld [vmem:[%s213_s2] ss:$0 sm:$0xff]  ;;  %vm147_vm5 = vcmask 123904  }
   0x4   :  { %v31_v5 = vsel %vm29_vm0, %v25_v2, 0.0  ;;  %v36_v7 = vsel %vm29_vm0, %v26_v4, 0.0 }
   0x5   :  { %v32_v8 = vadd.f32 %v31_v5, %v30_v3  ;;  %v37_v9 = vadd.f32 %v36_v7, %v35_v6  ;;  %v46_v16 = vsub.s32 %v43_v13, %v45_v14 }
   0x7   :  { %33 = vadd.xlane.f32.xlu0 %v32_v8 }
   0x8   :  { %v20_v20 = vld [vmem:[#allocation2] sm:$0x3] }
   0xb   :  { %38 = vadd.xlane.f32.xlu0 %v37_v9 }
  0x94   :  { %v34_v15 = vpop.xlane.xlu0 %33 }
  0x95   :  { %v47_v18 = vrot.slane %v34_v15, %v46_v16 }
  0x98   :  { %v39_v17 = vpop.xlane.xlu0 %38 }
  0x99   :  { %v51_v19 = vrot.slane %v39_v17, %v46_v16 }
  0x9b   :  { %v53_v21 = vsel %vm52_vm3, %v51_v19, %v47_v18 }
  0x9c   :  { %v55_v22 = vadd.f32 %v53_v21, %v20_v20 }
  0x9e   :  { %57 = vst.msk [vmem:[#allocation2] sm:$0x3] %vm18_vm1, %v55_v22 }
  0xa5   :  { %v61_v23 = vld [vmem:[#allocation2] sm:$0x3] }
  0xa6   :  { %161 = vmatmul.mubr.msk.f32.vlgmr.msra.gmra.mrb[0].mxu0 %vm70_vm4, %v61_v23 }
 0x179   :  { %v143_v25 = vpop.f32.mrb[0].mxu0 }
 0x17a   :  { %v144_v26 = vadd.f32 %v153_v24, %v143_v25  ;;  %v162_v27 = vpop.f32.mrb[1].mxu0 }
 0x17c   :  { %148 = vst.msk [vmem:[%s214_s3] sm:$0x3] %vm147_vm5, %v144_v26 }

</bundles_post_ra>
